<compile_context>
chip_gen: v5e
topology: v5e:2x2
jax: 0.10.0
libtpu: 0.0.40
codegen_flags: <defaults>
</compile_context>

<pallas_src>
from functools import lru_cache

import jax
import jax.numpy as jnp
from jax import lax
from jax.experimental import pallas as pl
from jax.experimental.pallas import tpu as pltpu


# ----------------------------- static config --------------------------------

def _generation_params():
    """Best-effort per-generation tuning (host side only, never affects
    correctness).  Returns (mxu_k_depth, vmem_limit_bytes)."""
    kind = ""
    try:
        kind = jax.devices()[0].device_kind.lower()
    except Exception:
        pass
    if "v7" in kind:
        return 256, 40 * 1024 * 1024      # v7x: 64 MiB VMEM/TC -> keep headroom
    if "v5" in kind:
        return 128, 64 * 1024 * 1024      # v5e/v5p: 128-deep MXU, 128 MiB VMEM
    return 256, 64 * 1024 * 1024          # v6e / default


def _pick_block_batch(n, c, hw, vmem_limit):
    """Images per grid step: amortize per-step pipeline overhead while keeping
    (a) at least 2 grid steps for the parallel axis (2 TCs on v7x) and
    (b) the working set well inside the VMEM budget."""
    per_image = 64 * c * hw               # rough bytes: I/O blocks (2x-buffered) + tap stack + acc
    for cand in (8, 4, 2):
        if n % cand == 0 and n // cand >= 2 and cand * per_image <= vmem_limit // 2:
            return cand
    return 1


def _prep_weight(w_oihw, fuse_k):
    """PyTorch OIHW (Cout, Cin, 3, 3) -> matmul layout, bf16 MXU operands."""
    cout, cin = w_oihw.shape[0], w_oihw.shape[1]
    if fuse_k:
        # Columns ordered (ky, kx, cin) to match the sublane tap-stack order.
        return jnp.transpose(w_oihw, (0, 2, 3, 1)).reshape(cout, 9 * cin).astype(jnp.bfloat16)
    # (tap, cout, cin) for the 9-accumulated-matmul path.
    return jnp.transpose(w_oihw, (2, 3, 0, 1)).reshape(9, cout, cin).astype(jnp.bfloat16)


# --------------------------------- kernel -----------------------------------

def _make_kernel(bt, H, W, C, fuse_k):
    HW = H * W

    def kernel(x_ref, w1_ref, s1_ref, b1_ref, w2_ref, s2_ref, b2_ref, out_ref):
        # Border masks, computed once per grid step (hoisted out of all loops).
        # Row/col indices are derived without integer div/rem: f32 floor with a
        # +0.5 guard is exact for these small integer ranges.
        lane = lax.broadcasted_iota(jnp.int32, (1, HW), 1).astype(jnp.float32)
        row = jnp.floor((lane + 0.5) * (1.0 / W))
        col = lane - row * W
        row_ok = {-1: row > 0.5, 0: None, 1: row < H - 1.5}
        col_ok = {-1: col > 0.5, 0: None, 1: col < W - 1.5}

        def conv3x3(x2d, w_ref):
            # x2d: (C, HW).  Each tap (dy, dx) is a static lane roll of the
            # whole tile plus a border mask; no padded scratch, no halo
            # zeroing, no strided slice+reshape materialization.
            taps = []
            for dy in (-1, 0, 1):
                for dx in (-1, 0, 1):
                    shift = (-(dy * W + dx)) % HW
                    t = x2d if shift == 0 else pltpu.roll(x2d, shift, axis=1)
                    m = row_ok[dy]
                    if col_ok[dx] is not None:
                        m = col_ok[dx] if m is None else (m & col_ok[dx])
                    if m is not None:
                        t = jnp.where(m, t, 0.0)     # (1,HW) mask broadcast over C
                    taps.append(t)
            if fuse_k:
                # im2col K-fusion: sublane-axis stack -> one (Cout,9C)@(9C,HW)
                # MXU matmul; a single f32->bf16 cast of the operand.
                patches = jnp.concatenate(taps, axis=0).astype(jnp.bfloat16)
                return jnp.dot(w_ref[...], patches,
                               preferred_element_type=jnp.float32)
            # Deep-C path: 9 accumulated K=C matmuls (K already fills the MXU).
            acc = jnp.zeros((w_ref.shape[1], HW), jnp.float32)
            for i, t in enumerate(taps):
                acc = acc + jnp.dot(w_ref[i], t.astype(jnp.bfloat16),
                                    preferred_element_type=jnp.float32)
            return acc

        for b in range(bt):                       # static unroll over images in the block
            x2d = x_ref[b]                        # (C, HW) f32 identity
            a1 = conv3x3(x2d, w1_ref)
            o1 = jnp.maximum(a1 * s1_ref[...] + b1_ref[...], 0.0)     # BN1 + ReLU (f32)
            a2 = conv3x3(o1, w2_ref)
            y = jnp.maximum(a2 * s2_ref[...] + b2_ref[...] + x2d, 0.0)  # BN2 + residual + ReLU
            out_ref[b] = y.astype(out_ref.dtype)  # lane-dense (C, HW) store

    return kernel


# -------------------------------- wrapper -----------------------------------

@lru_cache(maxsize=None)
def _build_basic_block(n, h, w, c, fuse_k, bt, vmem_limit):
    hw = h * w
    grid = (n // bt,)

    x_spec = pl.BlockSpec((bt, c, hw), lambda i: (i, 0, 0))
    out_spec = pl.BlockSpec((bt, c, hw), lambda i: (i, 0, 0))
    if fuse_k:
        w_spec = pl.BlockSpec((c, 9 * c), lambda i: (0, 0))
    else:
        w_spec = pl.BlockSpec((9, c, c), lambda i: (0, 0, 0))
    v_spec = pl.BlockSpec((c, 1), lambda i: (0, 0))

    call = pl.pallas_call(
        _make_kernel(bt, h, w, c, fuse_k),
        out_shape=jax.ShapeDtypeStruct((n, c, hw), jnp.float32),
        grid=grid,
        in_specs=[x_spec, w_spec, v_spec, v_spec, w_spec, v_spec, v_spec],
        out_specs=out_spec,
        compiler_params=pltpu.CompilerParams(
            dimension_semantics=("parallel",),         # batch steps across TCs (v7x)
            vmem_limit_bytes=vmem_limit),
    )

    def fwd(x_nchw, w1_oihw, s1, b1, w2_oihw, s2, b2):
        x2 = x_nchw.reshape(n, c, hw)                  # free trailing-dim merge (NCHW native)
        w1m = _prep_weight(w1_oihw, fuse_k)
        w2m = _prep_weight(w2_oihw, fuse_k)
        out = call(x2, w1m,
                   s1.reshape(c, 1).astype(jnp.float32),
                   b1.reshape(c, 1).astype(jnp.float32),
                   w2m,
                   s2.reshape(c, 1).astype(jnp.float32),
                   b2.reshape(c, 1).astype(jnp.float32))
        return out.reshape(n, c, h, w)

    return jax.jit(fwd)


def basic_block(x_nchw, w1_oihw, s1, b1, w2_oihw, s2, b2):
    """Fused BasicBlock forward (stride=1, downsample=None, eval-mode BN).

    x_nchw: (N, C, H, W) f32 (PyTorch layout).  w*: (C, C, 3, 3) OIHW.
    s*/b*: (C,) folded BatchNorm scale / bias.  Returns (N, C, H, W) f32.
    Result is returned asynchronously (no blocking in the wrapper).
    """
    n, c, h, w = x_nchw.shape
    assert w1_oihw.shape == (c, c, 3, 3) and w2_oihw.shape == (c, c, 3, 3), (
        "stride=1 / downsample=None requires inplanes == planes")
    mxu_k, vmem_limit = _generation_params()
    fuse_k = c < mxu_k                       # im2col only when K=C under-fills the MXU
    bt = _pick_block_batch(n, c, h * w, vmem_limit)
    fwd = _build_basic_block(n, h, w, c, fuse_k, bt, vmem_limit)
    return fwd(x_nchw, w1_oihw, s1, b1, w2_oihw, s2, b2)


def _fold_bn(gamma, beta, mean, var, eps=1e-5):
    scale = gamma / jnp.sqrt(var + eps)
    bias = beta - mean * scale
    return scale.astype(jnp.float32), bias.astype(jnp.float32)


# ---------------------------------- demo ------------------------------------

if __name__ == "__main__":
    key = jax.random.PRNGKey(0)
    N, C, H, W = 2, 8, 16, 16            # inplanes = planes = 8, stride = 1
    ks = jax.random.split(key, 11)

    # PyTorch-native NCHW input and OIHW conv weights.
    x = jax.random.normal(ks[0], (N, C, H, W), jnp.float32)
    w1 = jax.random.normal(ks[1], (C, C, 3, 3), jnp.float32) * 0.1
    w2 = jax.random.normal(ks[2], (C, C, 3, 3), jnp.float32) * 0.1

    # Eval-mode BatchNorm parameters (deterministic synthetic values).
    g1 = 1.0 + 0.1 * jax.random.normal(ks[3], (C,), jnp.float32)
    be1 = 0.1 * jax.random.normal(ks[4], (C,), jnp.float32)
    m1 = 0.1 * jax.random.normal(ks[5], (C,), jnp.float32)
    v1 = jnp.abs(jax.random.normal(ks[6], (C,), jnp.float32)) + 0.5
    g2 = 1.0 + 0.1 * jax.random.normal(ks[7], (C,), jnp.float32)
    be2 = 0.1 * jax.random.normal(ks[8], (C,), jnp.float32)
    m2 = 0.1 * jax.random.normal(ks[9], (C,), jnp.float32)
    v2 = jnp.abs(jax.random.normal(ks[10], (C,), jnp.float32)) + 0.5

    s1, b1 = _fold_bn(g1, be1, m1, v1)
    s2, b2 = _fold_bn(g2, be2, m2, v2)

    out = basic_block(x, w1, s1, b1, w2, s2, b2)
    out = jax.block_until_ready(out)

    # Pure-JAX reference of the same forward pass (precision-matched: bf16 conv
    # operands, f32 accumulation, f32 BN / residual / ReLU).
    def conv3x3_ref(z, wt):
        return lax.conv_general_dilated(
            z.astype(jnp.bfloat16), wt.astype(jnp.bfloat16),
            window_strides=(1, 1), padding=((1, 1), (1, 1)),
            dimension_numbers=("NCHW", "OIHW", "NCHW"),
            preferred_element_type=jnp.float32)

    r = conv3x3_ref(x, w1) * s1[None, :, None, None] + b1[None, :, None, None]
    r = jnp.maximum(r, 0.0)
    r = conv3x3_ref(r, w2) * s2[None, :, None, None] + b2[None, :, None, None]
    r = jnp.maximum(r + x, 0.0)

    assert out.shape == (N, C, H, W)
    assert jnp.allclose(out, r, rtol=2e-2, atol=2e-2), "mismatch vs reference"
    print("KERNEL_OK")
</pallas_src>

<mosaic_0001>
module attributes {stable_mosaic.version = 11 : i64} {
  func.func @kernel(%arg0: i32, %arg1: memref<1x8x256xf32, #tpu.memory_space<vmem>>, %arg2: memref<8x72xbf16, #tpu.memory_space<vmem>>, %arg3: memref<8x1xf32, #tpu.memory_space<vmem>>, %arg4: memref<8x1xf32, #tpu.memory_space<vmem>>, %arg5: memref<8x72xbf16, #tpu.memory_space<vmem>>, %arg6: memref<8x1xf32, #tpu.memory_space<vmem>>, %arg7: memref<8x1xf32, #tpu.memory_space<vmem>>, %arg8: memref<1x8x256xf32, #tpu.memory_space<vmem>>) attributes {dimension_semantics = [#tpu.dimension_semantics<parallel>], iteration_bounds = array<i64: 2>, scalar_prefetch = 0 : i64, scratch_operands = 0 : i64, tpu.core_type = #tpu.core_type<tc>, window_params = [{transform_indices = @transform_0, window_bounds = array<i64: 1, 8, 256>}, {pipeline_mode = #tpu.pipeline_mode<synchronous>, transform_indices = @transform_1, window_bounds = array<i64: 8, 72>}, {pipeline_mode = #tpu.pipeline_mode<synchronous>, transform_indices = @transform_2, window_bounds = array<i64: 8, 1>}, {pipeline_mode = #tpu.pipeline_mode<synchronous>, transform_indices = @transform_3, window_bounds = array<i64: 8, 1>}, {pipeline_mode = #tpu.pipeline_mode<synchronous>, transform_indices = @transform_4, window_bounds = array<i64: 8, 72>}, {pipeline_mode = #tpu.pipeline_mode<synchronous>, transform_indices = @transform_5, window_bounds = array<i64: 8, 1>}, {pipeline_mode = #tpu.pipeline_mode<synchronous>, transform_indices = @transform_6, window_bounds = array<i64: 8, 1>}, {transform_indices = @transform_7, window_bounds = array<i64: 1, 8, 256>}]} {
    %0 = tpu.iota {dimensions = array<i32: 1>} : vector<1x256xi32>
    %1 = arith.sitofp %0 : vector<1x256xi32> to vector<1x256xf32>
    %cst = arith.constant 5.000000e-01 : f32
    %2 = vector.broadcast %cst : f32 to vector<1x256xf32>
    %3 = arith.addf %1, %2 : vector<1x256xf32>
    %cst_0 = arith.constant 6.250000e-02 : f32
    %4 = vector.broadcast %cst_0 : f32 to vector<1x256xf32>
    %5 = arith.mulf %3, %4 : vector<1x256xf32>
    %6 = math.floor %5 : vector<1x256xf32>
    %cst_1 = arith.constant 1.600000e+01 : f32
    %7 = vector.broadcast %cst_1 : f32 to vector<1x256xf32>
    %8 = arith.mulf %6, %7 : vector<1x256xf32>
    %9 = arith.subf %1, %8 : vector<1x256xf32>
    %cst_2 = arith.constant 5.000000e-01 : f32
    %10 = vector.broadcast %cst_2 : f32 to vector<1x256xf32>
    %11 = arith.cmpf ogt, %6, %10 : vector<1x256xf32>
    %cst_3 = arith.constant 1.450000e+01 : f32
    %12 = vector.broadcast %cst_3 : f32 to vector<1x256xf32>
    %13 = arith.cmpf olt, %6, %12 : vector<1x256xf32>
    %cst_4 = arith.constant 5.000000e-01 : f32
    %14 = vector.broadcast %cst_4 : f32 to vector<1x256xf32>
    %15 = arith.cmpf ogt, %9, %14 : vector<1x256xf32>
    %cst_5 = arith.constant 1.450000e+01 : f32
    %16 = vector.broadcast %cst_5 : f32 to vector<1x256xf32>
    %17 = arith.cmpf olt, %9, %16 : vector<1x256xf32>
    %c0 = arith.constant 0 : index
    %c0_6 = arith.constant 0 : index
    %c0_7 = arith.constant 0 : index
    %18 = vector.load %arg1[%c0, %c0_6, %c0_7] : memref<1x8x256xf32, #tpu.memory_space<vmem>>, vector<1x8x256xf32>
    %19 = vector.shape_cast %18 : vector<1x8x256xf32> to vector<8x256xf32>
    %c17_i32 = arith.constant 17 : i32
    %20 = tpu.dynamic_rotate %19 by %c17_i32 dim 1 : vector<8x256xf32>, i32 -> vector<8x256xf32>
    %21 = arith.andi %11, %15 : vector<1x256xi1>
    %cst_8 = arith.constant 0.000000e+00 : f32
    %22 = vector.shape_cast %21 : vector<1x256xi1> to vector<1x256xi1>
    %23 = vector.broadcast %22 : vector<1x256xi1> to vector<8x256xi1>
    %24 = vector.broadcast %cst_8 : f32 to vector<8x256xf32>
    %25 = arith.select %23, %20, %24 : vector<8x256xi1>, vector<8x256xf32>
    %c16_i32 = arith.constant 16 : i32
    %26 = tpu.dynamic_rotate %19 by %c16_i32 dim 1 : vector<8x256xf32>, i32 -> vector<8x256xf32>
    %cst_9 = arith.constant 0.000000e+00 : f32
    %27 = vector.shape_cast %11 : vector<1x256xi1> to vector<1x256xi1>
    %28 = vector.broadcast %27 : vector<1x256xi1> to vector<8x256xi1>
    %29 = vector.broadcast %cst_9 : f32 to vector<8x256xf32>
    %30 = arith.select %28, %26, %29 : vector<8x256xi1>, vector<8x256xf32>
    %c15_i32 = arith.constant 15 : i32
    %31 = tpu.dynamic_rotate %19 by %c15_i32 dim 1 : vector<8x256xf32>, i32 -> vector<8x256xf32>
    %32 = arith.andi %11, %17 : vector<1x256xi1>
    %cst_10 = arith.constant 0.000000e+00 : f32
    %33 = vector.shape_cast %32 : vector<1x256xi1> to vector<1x256xi1>
    %34 = vector.broadcast %33 : vector<1x256xi1> to vector<8x256xi1>
    %35 = vector.broadcast %cst_10 : f32 to vector<8x256xf32>
    %36 = arith.select %34, %31, %35 : vector<8x256xi1>, vector<8x256xf32>
    %c1_i32 = arith.constant 1 : i32
    %37 = tpu.dynamic_rotate %19 by %c1_i32 dim 1 : vector<8x256xf32>, i32 -> vector<8x256xf32>
    %cst_11 = arith.constant 0.000000e+00 : f32
    %38 = vector.shape_cast %15 : vector<1x256xi1> to vector<1x256xi1>
    %39 = vector.broadcast %38 : vector<1x256xi1> to vector<8x256xi1>
    %40 = vector.broadcast %cst_11 : f32 to vector<8x256xf32>
    %41 = arith.select %39, %37, %40 : vector<8x256xi1>, vector<8x256xf32>
    %c255_i32 = arith.constant 255 : i32
    %42 = tpu.dynamic_rotate %19 by %c255_i32 dim 1 : vector<8x256xf32>, i32 -> vector<8x256xf32>
    %cst_12 = arith.constant 0.000000e+00 : f32
    %43 = vector.shape_cast %17 : vector<1x256xi1> to vector<1x256xi1>
    %44 = vector.broadcast %43 : vector<1x256xi1> to vector<8x256xi1>
    %45 = vector.broadcast %cst_12 : f32 to vector<8x256xf32>
    %46 = arith.select %44, %42, %45 : vector<8x256xi1>, vector<8x256xf32>
    %c241_i32 = arith.constant 241 : i32
    %47 = tpu.dynamic_rotate %19 by %c241_i32 dim 1 : vector<8x256xf32>, i32 -> vector<8x256xf32>
    %48 = arith.andi %13, %15 : vector<1x256xi1>
    %cst_13 = arith.constant 0.000000e+00 : f32
    %49 = vector.shape_cast %48 : vector<1x256xi1> to vector<1x256xi1>
    %50 = vector.broadcast %49 : vector<1x256xi1> to vector<8x256xi1>
    %51 = vector.broadcast %cst_13 : f32 to vector<8x256xf32>
    %52 = arith.select %50, %47, %51 : vector<8x256xi1>, vector<8x256xf32>
    %c240_i32 = arith.constant 240 : i32
    %53 = tpu.dynamic_rotate %19 by %c240_i32 dim 1 : vector<8x256xf32>, i32 -> vector<8x256xf32>
    %cst_14 = arith.constant 0.000000e+00 : f32
    %54 = vector.shape_cast %13 : vector<1x256xi1> to vector<1x256xi1>
    %55 = vector.broadcast %54 : vector<1x256xi1> to vector<8x256xi1>
    %56 = vector.broadcast %cst_14 : f32 to vector<8x256xf32>
    %57 = arith.select %55, %53, %56 : vector<8x256xi1>, vector<8x256xf32>
    %c239_i32 = arith.constant 239 : i32
    %58 = tpu.dynamic_rotate %19 by %c239_i32 dim 1 : vector<8x256xf32>, i32 -> vector<8x256xf32>
    %59 = arith.andi %13, %17 : vector<1x256xi1>
    %cst_15 = arith.constant 0.000000e+00 : f32
    %60 = vector.shape_cast %59 : vector<1x256xi1> to vector<1x256xi1>
    %61 = vector.broadcast %60 : vector<1x256xi1> to vector<8x256xi1>
    %62 = vector.broadcast %cst_15 : f32 to vector<8x256xf32>
    %63 = arith.select %61, %58, %62 : vector<8x256xi1>, vector<8x256xf32>
    %64 = tpu.concatenate %25, %30, %36, %41, %19, %46, %52, %57, %63 in 0 : vector<8x256xf32>, vector<8x256xf32>, vector<8x256xf32>, vector<8x256xf32>, vector<8x256xf32>, vector<8x256xf32>, vector<8x256xf32>, vector<8x256xf32>, vector<8x256xf32> -> vector<72x256xf32>
    %65 = arith.truncf %64 : vector<72x256xf32> to vector<72x256xbf16>
    %c0_16 = arith.constant 0 : index
    %c0_17 = arith.constant 0 : index
    %66 = vector.load %arg2[%c0_16, %c0_17] : memref<8x72xbf16, #tpu.memory_space<vmem>>, vector<8x72xbf16>
    %cst_18 = arith.constant dense<0.000000e+00> : vector<8x256xf32>
    %67 = tpu.matmul %66, %65, %cst_18 {dimension_numbers = #tpu.dot_dimension_numbers<[1], [0], [0], [1], [0, 0, 1, 1], [], []>} : vector<8x72xbf16>, vector<72x256xbf16>, vector<8x256xf32> -> vector<8x256xf32>
    %c0_19 = arith.constant 0 : index
    %c0_20 = arith.constant 0 : index
    %68 = vector.load %arg3[%c0_19, %c0_20] : memref<8x1xf32, #tpu.memory_space<vmem>>, vector<8x1xf32>
    %69 = vector.broadcast %68 : vector<8x1xf32> to vector<8x256xf32>
    %70 = arith.mulf %67, %69 : vector<8x256xf32>
    %c0_21 = arith.constant 0 : index
    %c0_22 = arith.constant 0 : index
    %71 = vector.load %arg4[%c0_21, %c0_22] : memref<8x1xf32, #tpu.memory_space<vmem>>, vector<8x1xf32>
    %72 = vector.broadcast %71 : vector<8x1xf32> to vector<8x256xf32>
    %73 = arith.addf %70, %72 : vector<8x256xf32>
    %cst_23 = arith.constant 0.000000e+00 : f32
    %74 = vector.broadcast %cst_23 : f32 to vector<8x256xf32>
    %75 = arith.maximumf %73, %74 : vector<8x256xf32>
    %c17_i32_24 = arith.constant 17 : i32
    %76 = tpu.dynamic_rotate %75 by %c17_i32_24 dim 1 : vector<8x256xf32>, i32 -> vector<8x256xf32>
    %77 = arith.andi %11, %15 : vector<1x256xi1>
    %cst_25 = arith.constant 0.000000e+00 : f32
    %78 = vector.shape_cast %77 : vector<1x256xi1> to vector<1x256xi1>
    %79 = vector.broadcast %78 : vector<1x256xi1> to vector<8x256xi1>
    %80 = vector.broadcast %cst_25 : f32 to vector<8x256xf32>
    %81 = arith.select %79, %76, %80 : vector<8x256xi1>, vector<8x256xf32>
    %c16_i32_26 = arith.constant 16 : i32
    %82 = tpu.dynamic_rotate %75 by %c16_i32_26 dim 1 : vector<8x256xf32>, i32 -> vector<8x256xf32>
    %cst_27 = arith.constant 0.000000e+00 : f32
    %83 = vector.shape_cast %11 : vector<1x256xi1> to vector<1x256xi1>
    %84 = vector.broadcast %83 : vector<1x256xi1> to vector<8x256xi1>
    %85 = vector.broadcast %cst_27 : f32 to vector<8x256xf32>
    %86 = arith.select %84, %82, %85 : vector<8x256xi1>, vector<8x256xf32>
    %c15_i32_28 = arith.constant 15 : i32
    %87 = tpu.dynamic_rotate %75 by %c15_i32_28 dim 1 : vector<8x256xf32>, i32 -> vector<8x256xf32>
    %88 = arith.andi %11, %17 : vector<1x256xi1>
    %cst_29 = arith.constant 0.000000e+00 : f32
    %89 = vector.shape_cast %88 : vector<1x256xi1> to vector<1x256xi1>
    %90 = vector.broadcast %89 : vector<1x256xi1> to vector<8x256xi1>
    %91 = vector.broadcast %cst_29 : f32 to vector<8x256xf32>
    %92 = arith.select %90, %87, %91 : vector<8x256xi1>, vector<8x256xf32>
    %c1_i32_30 = arith.constant 1 : i32
    %93 = tpu.dynamic_rotate %75 by %c1_i32_30 dim 1 : vector<8x256xf32>, i32 -> vector<8x256xf32>
    %cst_31 = arith.constant 0.000000e+00 : f32
    %94 = vector.shape_cast %15 : vector<1x256xi1> to vector<1x256xi1>
    %95 = vector.broadcast %94 : vector<1x256xi1> to vector<8x256xi1>
    %96 = vector.broadcast %cst_31 : f32 to vector<8x256xf32>
    %97 = arith.select %95, %93, %96 : vector<8x256xi1>, vector<8x256xf32>
    %c255_i32_32 = arith.constant 255 : i32
    %98 = tpu.dynamic_rotate %75 by %c255_i32_32 dim 1 : vector<8x256xf32>, i32 -> vector<8x256xf32>
    %cst_33 = arith.constant 0.000000e+00 : f32
    %99 = vector.shape_cast %17 : vector<1x256xi1> to vector<1x256xi1>
    %100 = vector.broadcast %99 : vector<1x256xi1> to vector<8x256xi1>
    %101 = vector.broadcast %cst_33 : f32 to vector<8x256xf32>
    %102 = arith.select %100, %98, %101 : vector<8x256xi1>, vector<8x256xf32>
    %c241_i32_34 = arith.constant 241 : i32
    %103 = tpu.dynamic_rotate %75 by %c241_i32_34 dim 1 : vector<8x256xf32>, i32 -> vector<8x256xf32>
    %104 = arith.andi %13, %15 : vector<1x256xi1>
    %cst_35 = arith.constant 0.000000e+00 : f32
    %105 = vector.shape_cast %104 : vector<1x256xi1> to vector<1x256xi1>
    %106 = vector.broadcast %105 : vector<1x256xi1> to vector<8x256xi1>
    %107 = vector.broadcast %cst_35 : f32 to vector<8x256xf32>
    %108 = arith.select %106, %103, %107 : vector<8x256xi1>, vector<8x256xf32>
    %c240_i32_36 = arith.constant 240 : i32
    %109 = tpu.dynamic_rotate %75 by %c240_i32_36 dim 1 : vector<8x256xf32>, i32 -> vector<8x256xf32>
    %cst_37 = arith.constant 0.000000e+00 : f32
    %110 = vector.shape_cast %13 : vector<1x256xi1> to vector<1x256xi1>
    %111 = vector.broadcast %110 : vector<1x256xi1> to vector<8x256xi1>
    %112 = vector.broadcast %cst_37 : f32 to vector<8x256xf32>
    %113 = arith.select %111, %109, %112 : vector<8x256xi1>, vector<8x256xf32>
    %c239_i32_38 = arith.constant 239 : i32
    %114 = tpu.dynamic_rotate %75 by %c239_i32_38 dim 1 : vector<8x256xf32>, i32 -> vector<8x256xf32>
    %115 = arith.andi %13, %17 : vector<1x256xi1>
    %cst_39 = arith.constant 0.000000e+00 : f32
    %116 = vector.shape_cast %115 : vector<1x256xi1> to vector<1x256xi1>
    %117 = vector.broadcast %116 : vector<1x256xi1> to vector<8x256xi1>
    %118 = vector.broadcast %cst_39 : f32 to vector<8x256xf32>
    %119 = arith.select %117, %114, %118 : vector<8x256xi1>, vector<8x256xf32>
    %120 = tpu.concatenate %81, %86, %92, %97, %75, %102, %108, %113, %119 in 0 : vector<8x256xf32>, vector<8x256xf32>, vector<8x256xf32>, vector<8x256xf32>, vector<8x256xf32>, vector<8x256xf32>, vector<8x256xf32>, vector<8x256xf32>, vector<8x256xf32> -> vector<72x256xf32>
    %121 = arith.truncf %120 : vector<72x256xf32> to vector<72x256xbf16>
    %c0_40 = arith.constant 0 : index
    %c0_41 = arith.constant 0 : index
    %122 = vector.load %arg5[%c0_40, %c0_41] : memref<8x72xbf16, #tpu.memory_space<vmem>>, vector<8x72xbf16>
    %cst_42 = arith.constant dense<0.000000e+00> : vector<8x256xf32>
    %123 = tpu.matmul %122, %121, %cst_42 {dimension_numbers = #tpu.dot_dimension_numbers<[1], [0], [0], [1], [0, 0, 1, 1], [], []>} : vector<8x72xbf16>, vector<72x256xbf16>, vector<8x256xf32> -> vector<8x256xf32>
    %c0_43 = arith.constant 0 : index
    %c0_44 = arith.constant 0 : index
    %124 = vector.load %arg6[%c0_43, %c0_44] : memref<8x1xf32, #tpu.memory_space<vmem>>, vector<8x1xf32>
    %125 = vector.broadcast %124 : vector<8x1xf32> to vector<8x256xf32>
    %126 = arith.mulf %123, %125 : vector<8x256xf32>
    %c0_45 = arith.constant 0 : index
    %c0_46 = arith.constant 0 : index
    %127 = vector.load %arg7[%c0_45, %c0_46] : memref<8x1xf32, #tpu.memory_space<vmem>>, vector<8x1xf32>
    %128 = vector.broadcast %127 : vector<8x1xf32> to vector<8x256xf32>
    %129 = arith.addf %126, %128 : vector<8x256xf32>
    %130 = arith.addf %129, %19 : vector<8x256xf32>
    %cst_47 = arith.constant 0.000000e+00 : f32
    %131 = vector.broadcast %cst_47 : f32 to vector<8x256xf32>
    %132 = arith.maximumf %130, %131 : vector<8x256xf32>
    %c0_48 = arith.constant 0 : index
    %c0_49 = arith.constant 0 : index
    %c0_50 = arith.constant 0 : index
    %133 = vector.load %arg8[%c0_48, %c0_49, %c0_50] : memref<1x8x256xf32, #tpu.memory_space<vmem>>, vector<1x8x256xf32>
    %134 = vector.shape_cast %133 : vector<1x8x256xf32> to vector<8x256xf32>
    %135 = vector.shape_cast %132 : vector<8x256xf32> to vector<1x8x256xf32>
    tpu.vector_store %arg8[%c0_48, %c0_49, %c0_50], %135 {strides = array<i32>} : memref<1x8x256xf32, #tpu.memory_space<vmem>>, vector<1x8x256xf32>,
    return
  }
  func.func @transform_0(%arg0: i32) -> (i32, i32, i32) {
    %c0_i32 = arith.constant 0 : i32
    %c0_i32_0 = arith.constant 0 : i32
    %c0_i32_1 = arith.constant 0 : i32
    return %arg0, %c0_i32, %c0_i32_0 : i32, i32, i32
  }
  func.func @transform_1(%arg0: i32) -> (i32, i32) {
    %c0_i32 = arith.constant 0 : i32
    %c0_i32_0 = arith.constant 0 : i32
    %c0_i32_1 = arith.constant 0 : i32
    return %c0_i32, %c0_i32_0 : i32, i32
  }
  func.func @transform_2(%arg0: i32) -> (i32, i32) {
    %c0_i32 = arith.constant 0 : i32
    %c0_i32_0 = arith.constant 0 : i32
    %c0_i32_1 = arith.constant 0 : i32
    return %c0_i32, %c0_i32_0 : i32, i32
  }
  func.func @transform_3(%arg0: i32) -> (i32, i32) {
    %c0_i32 = arith.constant 0 : i32
    %c0_i32_0 = arith.constant 0 : i32
    %c0_i32_1 = arith.constant 0 : i32
    return %c0_i32, %c0_i32_0 : i32, i32
  }
  func.func @transform_4(%arg0: i32) -> (i32, i32) {
    %c0_i32 = arith.constant 0 : i32
    %c0_i32_0 = arith.constant 0 : i32
    %c0_i32_1 = arith.constant 0 : i32
    return %c0_i32, %c0_i32_0 : i32, i32
  }
  func.func @transform_5(%arg0: i32) -> (i32, i32) {
    %c0_i32 = arith.constant 0 : i32
    %c0_i32_0 = arith.constant 0 : i32
    %c0_i32_1 = arith.constant 0 : i32
    return %c0_i32, %c0_i32_0 : i32, i32
  }
  func.func @transform_6(%arg0: i32) -> (i32, i32) {
    %c0_i32 = arith.constant 0 : i32
    %c0_i32_0 = arith.constant 0 : i32
    %c0_i32_1 = arith.constant 0 : i32
    return %c0_i32, %c0_i32_0 : i32, i32
  }
  func.func @transform_7(%arg0: i32) -> (i32, i32, i32) {
    %c0_i32 = arith.constant 0 : i32
    %c0_i32_0 = arith.constant 0 : i32
    %c0_i32_1 = arith.constant 0 : i32
    return %arg0, %c0_i32, %c0_i32_0 : i32, i32, i32
  }
}

</mosaic_0001>

<bundles_post_ra>
// kernel: fwd.1
= control target key start
LH: loop header
LB: loop body
LE: loop exit
PB: predicated region body
PF: predicated region fallthrough
CT: control target
= control target key end

     0   :  { %s894_s24 = smov 0   ;;  %s1202_s0 = inlined_call_operand.vmem [shape: f32[2,8,256], index: 0, kind: input, shape index: {}]   ;;  %s1203_s1 = inlined_call_operand.vmem [shape: bf16[8,72], index: 1, kind: input, shape index: {}]   ;;  %s1204_s2 = inlined_call_operand.vmem [shape: f32[8,1], index: 2, kind: input, shape index: {}]   ;;  %s1205_s3 = inlined_call_operand.vmem [shape: f32[8,1], index: 3, kind: input, shape index: {}]   ;;  %s1206_s4 = inlined_call_operand.vmem [shape: bf16[8,72], index: 4, kind: input, shape index: {}]   ;;  %s1207_s5 = inlined_call_operand.vmem [shape: f32[8,1], index: 5, kind: input, shape index: {}]   ;;  %s1208_s6 = inlined_call_operand.vmem [shape: f32[8,1], index: 6, kind: input, shape index: {}]   ;;  %s1209_s7 = inlined_call_operand.vmem [shape: f32[2,8,256], index: 7, kind: output, shape index: {}]  }
   0x1 LB: > { %s670_s25 = sadd.s32 4294967295, %s842_s24   ;;  %p674_p0 = scmp.ge.s32.totalorder %s842_s24, 1  ;;  %s842_s24 = sphi %s894_s24, %s17_s24  }
   0x2   : > { %p237_p1 = scmp.lt.s32.totalorder %s842_s24, 3 }
   0x4   : > { %p238_p2 = pnand %p674_p0, %p237_p1 }
   0x5   : > { %p269_p3 = scmp.lt.s32.totalorder (!%p238_p2), %s670_s25, 1  ;;  %s844_s30 = smov (!%p238_p2), 111  }
   0x6   : > { %241 = sbr.rel (%p238_p2) target bundleno = 580 (0x244), region = 48  ;;  %s845_s8 = smov (!%p238_p2), 112  }
   0x7   : > { %s846_s9 = smov (!%p238_p2), 15   ;;  %s847_s10 = smov (!%p238_p2), 113  }
   0x8   : > { %s848_s11 = smov (!%p238_p2), 127   ;;  %s849_s12 = smov (!%p238_p2), 1  }
   0x9   : > { %s850_s13 = smov (!%p238_p2), 16   ;;  %s851_s14 = smov (!%p238_p2), 17  }
   0xb   : > { %s1260_s25 = smov (!%p269_p3, %s670_s25), 1  ;;  %v280_v3 = vlaneseq  ;;  %v473_v19 = vld [vmem:[%s1205_s3] sm:$0xff]  ;;  %v852_v21 = vmov 0   ;;  %vm1210_vm7 = vcmask 1043456  }
   0xc   : > { %s733_s26 = sshll.u32 %s1260_s25, 4  ;;  %v465_v20 = vld [vmem:[%s1204_s2] sm:$0xff]  ;;  %794 = vset.pattern.permute.xlu0 %v852_v21  ;;  %793 = vset.pattern.permute.xlu2 %v852_v21 }
   0xd   : > { %s273_s29 = scalar_lea.vmem %s1202_s0, %s733_s26  ;;  %v924_v4 = vand.u32 127, %v280_v3  ;;  %835 = vset.pattern.permute.xlu1 %v852_v21 }
   0xe   : > { %v910_v0 = vld [vmem:[%s273_s29] sm:$0xff]  ;;  %v912_v1 = vld [vmem:[%s273_s29 + $0x8] sm:$0xff] }
   0xf   : > { %v753_v2 = vpack.i.bf16 %v912_v1, %v910_v0  ;;  %v282_v5 = vadd.s32 128, %v924_v4  ;;  %v283_v6 = vcvt.s32.f32 %v924_v4  ;;  %vm1211_vm4 = vcmp.lt.s32.totalorder %v924_v4, 111 }
  0x10   : > { %vm1214_vm10 = vcmp.lt.s32.totalorder %v924_v4, 112  ;;  %vm1215_vm11 = vcmp.lt.s32.totalorder %v924_v4, 113  ;;  %vm1213_vm14 = vcmp.lt.s32.totalorder %v924_v4, 127  ;;  %vm1216_vm15 = vcmp.lt.s32.totalorder %v924_v4, 15 }
  0x11   : > { %754 = vrot.lane.b32.xlu0 %v753_v2, %s844_s30  ;;  %764 = vrot.lane.b32.xlu1 %v753_v2, %s845_s8  ;;  %v284_v7 = vcvt.s32.f32 %v282_v5  ;;  %v285_v8 = vadd.f32 0.5, %v283_v6 }
  0x12   : > { %774 = vrot.lane.b32.xlu2 %v753_v2, %s846_s9 }
  0x13   : > { %v286_v9 = vadd.f32 0.5, %v284_v7  ;;  %v287_v10 = vmul.f32 0.0625, %v285_v8 }
  0x15   : > { %v288_v11 = vmul.f32 0.0625, %v286_v9  ;;  %v928_v12 = vfloor.f32 %v287_v10 }
  0x17   : > { %v930_v13 = vfloor.f32 %v288_v11  ;;  %v291_v14 = vmul.f32 16.0, %v928_v12  ;;  %vm297_vm0 = vcmp.lt.f32.partialorder %v928_v12, 14.5 }
  0x19   : > { %759 = vrot.lane.b32.xlu0 %v753_v2, %s847_s10  ;;  %769 = vrot.lane.b32.xlu1 %v753_v2, %s848_s11  ;;  %v292_v15 = vmul.f32 16.0, %v930_v13  ;;  %v934_v16 = vsub.f32 %v283_v6, %v291_v14  ;;  %vm298_vm2 = vcmp.lt.f32.partialorder %v930_v13, 14.5 }
  0x1a   : > { %779 = vrot.lane.b32.xlu2 %v753_v2, %s849_s12 }
  0x1b   : > { %v936_v17 = vsub.f32 %v284_v7, %v292_v15  ;;  %vm301_vm1 = vcmp.lt.f32.partialorder %v934_v16, 14.5  ;;  %vm299_vm8 = vcmp.gt.f32.partialorder %v934_v16, 0.5  ;;  %v557_v15 = vld [vmem:[%s1206_s4] sm:$0xf] }
  0x1c   : > { %vm955_vm5 = vmand %vm297_vm0, %vm301_vm1 }
  0x1d   : > { %vm302_vm3 = vcmp.lt.f32.partialorder %v936_v17, 14.5  ;;  %vm1212_vm9 = vcmp.gt.f32.partialorder %v936_v17, 0.5  ;;  %vm986_vm12 = vmand %vm297_vm0, %vm299_vm8 }
  0x1e   : > { %vm963_vm6 = vmand %vm298_vm2, %vm302_vm3 }
  0x1f   : > { %vm382_vm13 = vmand %vm298_vm2, %vm1212_vm9 }
  0x20   : > { %vm1016_vm9 = vmpackc.low %vm298_vm2, %vm382_vm13  ;;  %vm296_vm2 = vcmp.gt.f32.partialorder %v930_v13, 0.5 }
  0x21   : > { %789 = vrot.lane.b32.xlu1 %v753_v2, %s850_s13  ;;  %784 = vrot.lane.b32.xlu0 %v753_v2, %s851_s14 }
  0x22   : > { %468 = vperm.xlu2 %793, %v465_v20  }
  0x29   : > { %476 = vperm.xlu0 %794, %v473_v19  }
  0x6c   : > { %v938_v18 = vpop.permute.xlu2 %774 }
  0x6d   : > { %v777_v36 = vunpack.i.h.bf16 %v938_v18  ;;  %v776_v41 = vunpack.i.l.bf16 %v938_v18 }
  0x6f   : > { %v339_v2 = vsel %vm1216_vm15, %v777_v36, %v776_v41  ;;  %v338_v3 = vsel %vm1216_vm15, %v776_v41, %v777_v36  ;;  %v601_v41 = vld [vmem:[%s1208_s6] sm:$0xff] }
  0x74   : > { %v780_v37 = vpop.permute.xlu2 %779 }
  0x75   : > { %v782_v48 = vunpack.i.h.bf16 %v780_v37  ;;  %v781_v57 = vunpack.i.l.bf16 %v780_v37 }
  0x7c   : > { %v469_v13 = vpop.permute.xlu2 %468 }
  0x83   : > { %v755_v22 = vpop.permute.xlu0 %754  ;;  %v765_v23 = vpop.permute.xlu1 %764 }
  0x84   : > { %v757_v25 = vunpack.i.h.bf16 %v755_v22  ;;  %v756_v26 = vunpack.i.l.bf16 %v755_v22  ;;  %v767_v34 = vunpack.i.h.bf16 %v765_v23  ;;  %v766_v35 = vunpack.i.l.bf16 %v765_v23 }
  0x86   : > { %v407_v28 = vsel %vm1211_vm4, %v756_v26, %v757_v25  ;;  %v408_v29 = vsel %vm1211_vm4, %v757_v25, %v756_v26  ;;  %v394_v49 = vsel %vm1214_vm10, %v766_v35, %v767_v34  ;;  %v395_v51 = vsel %vm1214_vm10, %v767_v34, %v766_v35  ;;  %vm341_vm10 = vmand %vm296_vm2, %vm302_vm3 }
  0x87   : > { %v415_v30 = vsel %vm955_vm5, %v407_v28, 0.0  ;;  %v416_v31 = vsel %vm963_vm6, %v408_v29, 0.0  ;;  %vm295_vm4 = vcmp.gt.f32.partialorder %v928_v12, 0.5  ;;  %v427_v12 = vld [vmem:[%s1203_s1] sm:$0xf] }
  0x88   : > { %v425_v32 = vpack.c.bf16 %v415_v30, %v415_v30  ;;  %v426_v33 = vpack.c.bf16 %v416_v31, %v416_v31 }
  0x8a   : > { %v434_v38 = vsel %vm1210_vm7, %v425_v32, 0  ;;  %v437_v39 = vsel %vm1210_vm7, %v426_v33, 0  ;;  %vm1003_vm7 = vmpackc.low %vm297_vm0, %vm986_vm12  ;;  %vm853_vm0 = vmmov 1  }
  0x8b   : > { %v760_v42 = vpop.permute.xlu0 %759  ;;  %442 = vmatpush.bf16.msra.mxu0 %v434_v38  ;;  %455 = vmatpush.bf16.msra.mxu1 %v437_v39  ;;  %v770_v43 = vpop.permute.xlu1 %769  ;;  %vm1026_vm12 = vmpackc.low %vm301_vm1, %vm853_vm0 }
  0x8c   : > { %v762_v44 = vunpack.i.h.bf16 %v760_v42  ;;  %v761_v45 = vunpack.i.l.bf16 %v760_v42  ;;  %v772_v46 = vunpack.i.h.bf16 %v770_v43  ;;  %v771_v47 = vunpack.i.l.bf16 %v770_v43  ;;  %vm1033_vm13 = vmpackc.low %vm302_vm3, %vm853_vm0  ;;  %v593_v43 = vld [vmem:[%s1207_s5] sm:$0xff] }
  0x8d   : > { %vm340_vm0 = vmand %vm295_vm4, %vm301_vm1  ;;  %vm1218_vm1 = vcmp.lt.s32.totalorder %v924_v4, 17  ;;  %vm1235_vm3 = vcmp.gt.f32.partialorder %v936_v17, 0.5 }
  0x8e   : > { %v379_v52 = vsel %vm1215_vm11, %v761_v45, %v762_v44  ;;  %v380_v53 = vsel %vm1215_vm11, %v762_v44, %v761_v45  ;;  %v366_v55 = vsel %vm1213_vm14, %v771_v47, %v772_v46  ;;  %v367_v56 = vsel %vm1213_vm14, %v772_v46, %v771_v47  ;;  %vm1064_vm15 = vmpackc.low %vm299_vm8, %vm340_vm0 }
  0x8f   : > { %v680_v58 = vpack.c.bf16 %v394_v49, %v379_v52  ;;  %v693_v59 = vpack.c.bf16 %v395_v51, %v380_v53  ;;  %vm1217_vm14 = vcmp.lt.s32.totalorder %v924_v4, 1  ;;  %v683_v62 = vpack.c.bf16 %v366_v55, %v910_v0  ;;  %vm312_vm0 = vmand %vm295_vm4, %vm299_vm8 }
  0x90   : > { %v696_v63 = vpack.c.bf16 %v367_v56, %v912_v1  ;;  %v354_v7 = vsel %vm1217_vm14, %v782_v48, %v781_v57  ;;  %v353_v8 = vsel %vm1217_vm14, %v781_v57, %v782_v48  ;;  %vm324_vm11 = vcmp.lt.s32.totalorder %v924_v4, 16  ;;  %vm1074_vm14 = vmpackc.low %vm1235_vm3, %vm341_vm10 }
  0x91   : > { %681 = vmatpush.bf16.msk.msra.mxu0 %vm1003_vm7, %v680_v58  ;;  %694 = vmatpush.bf16.msk.msra.mxu1 %vm1016_vm9, %v693_v59  ;;  %v686_v23 = vpack.c.bf16 %v354_v7, %v339_v2  ;;  %v699_v25 = vpack.c.bf16 %v353_v8, %v338_v3  ;;  %vm1238_vm10 = vmmov %vm1235_vm3 }
  0x92   : > { %vm313_vm3 = vmand %vm296_vm2, %vm1238_vm10  ;;  %vm1245_vm10 = vcmask 1043456  }
  0x93   : > { %v790_v5 = vpop.permute.xlu1 %789  ;;  %v785_v6 = vpop.permute.xlu0 %784  ;;  %vm1100_vm8 = vmpackc.low %vm295_vm4, %vm312_vm0  ;;  %vm428_vm4 = vcmask 588800  }
  0x94   : > { %v792_v9 = vunpack.i.h.bf16 %v790_v5  ;;  %v791_v10 = vunpack.i.l.bf16 %v790_v5  ;;  %v787_v11 = vunpack.i.h.bf16 %v785_v6  ;;  %v786_v14 = vunpack.i.l.bf16 %v785_v6 }
  0x95   : > { %684 = vmatpush.bf16.msk.msra.mxu0 %vm1026_vm12, %v683_v62  ;;  %697 = vmatpush.bf16.msk.msra.mxu1 %vm1033_vm13, %v696_v63 }
  0x96   : > { %v311_v19 = vsel %vm1218_vm1, %v787_v11, %v786_v14  ;;  %v326_v20 = vsel %vm324_vm11, %v792_v9, %v791_v10  ;;  %v310_v21 = vsel %vm1218_vm1, %v786_v14, %v787_v11  ;;  %v325_v22 = vsel %vm324_vm11, %v791_v10, %v792_v9  ;;  %vm1106_vm1 = vmpackc.low %vm296_vm2, %vm313_vm3 }
  0x97   : > { %v689_v26 = vpack.c.bf16 %v326_v20, %v311_v19  ;;  %v702_v28 = vpack.c.bf16 %v325_v22, %v310_v21  ;;  %vm1243_vm2 = vcmp.lt.s32.totalorder %v924_v4, 111  ;;  %vm1246_vm3 = vmmov %vm1245_vm10 }
  0x98   : > { %vm1244_vm0 = vmmov %vm1243_vm2 }
  0x99   : > { %687 = vmatpush.bf16.msk.msra.mxu0 %vm1064_vm15, %v686_v23  ;;  %700 = vmatpush.bf16.msk.msra.mxu1 %vm1074_vm14, %v699_v25 }
  0x9b   : > { %v477_v29 = vpop.permute.xlu0 %476 }
  0x9d   : > { %690 = vmatpush.bf16.msk.msra.mxu0 %vm1100_vm8, %v689_v26  ;;  %703 = vmatpush.bf16.msk.msra.mxu1 %vm1106_vm1, %v702_v28 }
  0xa0   : > { %691 = vmatmul.msk.bf16.vlgmr.msra.gmra.mxu0 %vm428_vm4, %v427_v12  ;;  %704 = vmatmul.msk.bf16.vlgmr.msra.gmra.mxu1 %vm428_vm4, %v427_v12 }
 0x11d   : > { %v448_v30 = vpop.f32.mrf.mxu0  ;;  %v461_v31 = vpop.f32.mrf.mxu1 }
 0x11e   : > { %v471_v32 = vmul.f32 %v469_v13, %v448_v30  ;;  %v472_v33 = vmul.f32 %v469_v13, %v461_v31 }
 0x120   : > { %v479_v34 = vadd.f32 %v477_v29, %v471_v32  ;;  %v480_v35 = vadd.f32 %v477_v29, %v472_v33 }
 0x122   : > { %v481_v36 = vmax.f32 %v479_v34, 0.0  ;;  %v482_v37 = vmax.f32 %v480_v35, 0.0 }
 0x124   : > { %v815_v38 = vpack.i.bf16 %v482_v37, %v481_v36 }
 0x125   : > { %v450_v39 = vpop.f32.mrf.mxu0  ;;  %v463_v40 = vpop.f32.mrf.mxu1 }
 0x126   : > { %816 = vrot.lane.b32.xlu0 %v815_v38, %s846_s9  ;;  %801 = vrot.lane.b32.xlu2 %v815_v38, %s847_s10  ;;  %s278_s9 = scalar_lea.vmem %s1209_s7, %s733_s26 }
 0x127   : > { %796 = vrot.lane.b32.xlu1 %v815_v38, %s844_s30 }
 0x12e   : > { %831 = vrot.lane.b32.xlu0 %v815_v38, %s850_s13  ;;  %811 = vrot.lane.b32.xlu2 %v815_v38, %s848_s11 }
 0x12f   : > { %806 = vrot.lane.b32.xlu1 %v815_v38, %s845_s8 }
 0x136   : > { %826 = vrot.lane.b32.xlu2 %v815_v38, %s851_s14 }
 0x137   : > { %821 = vrot.lane.b32.xlu1 %v815_v38, %s849_s12 }
 0x13e   : > { %604 = vperm.xlu2 %793, %v601_v41  }
 0x13f   : > { %596 = vperm.xlu1 %835, %v593_v43  }
 0x180   : > { %v802_v42 = vpop.permute.xlu2 %801 }
 0x181   : > { %v804_v57 = vunpack.i.h.bf16 %v802_v42  ;;  %v803_v58 = vunpack.i.l.bf16 %v802_v42 }
 0x188   : > { %v812_v53 = vpop.permute.xlu2 %811 }
 0x189   : > { %v814_v2 = vunpack.i.h.bf16 %v812_v53  ;;  %v813_v3 = vunpack.i.l.bf16 %v812_v53 }
 0x190   : > { %v827_v20 = vpop.permute.xlu2 %826 }
 0x191   : > { %v829_v30 = vunpack.i.h.bf16 %v827_v20  ;;  %v828_v31 = vunpack.i.l.bf16 %v827_v20 }
 0x198   : > { %v817_v49 = vpop.permute.xlu0 %816  ;;  %v605_v43 = vpop.permute.xlu2 %604 }
 0x199   : > { %v797_v44 = vpop.permute.xlu1 %796  ;;  %v819_v21 = vunpack.i.h.bf16 %v817_v49  ;;  %v818_v22 = vunpack.i.l.bf16 %v817_v49 }
 0x19a   : > { %v799_v45 = vunpack.i.h.bf16 %v797_v44  ;;  %v798_v46 = vunpack.i.l.bf16 %v797_v44 }
 0x19c   : > { %v543_v47 = vsel %vm1243_vm2, %v798_v46, %v799_v45  ;;  %v544_v48 = vsel %vm1244_vm0, %v799_v45, %v798_v46 }
 0x19d   : > { %v545_v51 = vsel %vm955_vm5, %v543_v47, 0.0  ;;  %v546_v52 = vsel %vm963_vm6, %v544_v48, 0.0  ;;  %vm1247_vm5 = vcmp.lt.s32.totalorder %v924_v4, 113  ;;  %vm1248_vm6 = vcmp.lt.s32.totalorder %v924_v4, 112 }
 0x19e   : > { %v555_v55 = vpack.c.bf16 %v545_v51, %v545_v51  ;;  %v556_v56 = vpack.c.bf16 %v546_v52, %v546_v52  ;;  %v527_v27 = vsel %vm1247_vm5, %v803_v58, %v804_v57  ;;  %vm1249_vm2 = vmmov %vm1247_vm5 }
 0x19f   : > { %v528_v7 = vsel %vm1249_vm2, %v804_v57, %v803_v58  ;;  %vm1250_vm0 = vmmov %vm1248_vm6 }
 0x1a0   : > { %v562_v59 = vsel %vm1245_vm10, %v555_v55, 0  ;;  %v565_v62 = vsel %vm1246_vm3, %v556_v56, 0  ;;  %vm1251_vm10 = vcmp.lt.s32.totalorder %v924_v4, 127  ;;  %v832_v19 = vpop.permute.xlu0 %831 }
 0x1a1   : > { %v807_v63 = vpop.permute.xlu1 %806  ;;  %570 = vmatpush.bf16.msra.mxu2 %v562_v59  ;;  %583 = vmatpush.bf16.msra.mxu3 %v565_v62  ;;  %v519_v11 = vsel %vm1251_vm10, %v813_v3, %v814_v2  ;;  %vm1252_vm3 = vmmov %vm1251_vm10  ;;  %v834_v28 = vunpack.i.h.bf16 %v832_v19  ;;  %v833_v12 = vunpack.i.l.bf16 %v832_v19 }
 0x1a2   : > { %v809_v5 = vunpack.i.h.bf16 %v807_v63  ;;  %v808_v24 = vunpack.i.l.bf16 %v807_v63  ;;  %v520_v14 = vsel %vm1252_vm3, %v814_v2, %v813_v3  ;;  %v709_v25 = vpack.c.bf16 %v519_v11, %v481_v36 }
 0x1a3   : > { %v722_v26 = vpack.c.bf16 %v520_v14, %v482_v37  ;;  %v496_v60 = vsel %vm324_vm11, %v834_v28, %v833_v12  ;;  %v495_v61 = vsel %vm324_vm11, %v833_v12, %v834_v28 }
 0x1a4   : > { %v535_v6 = vsel %vm1248_vm6, %v808_v24, %v809_v5  ;;  %v536_v8 = vsel %vm1250_vm0, %v809_v5, %v808_v24 }
 0x1a5   : > { %v706_v9 = vpack.c.bf16 %v535_v6, %v527_v27  ;;  %v719_v10 = vpack.c.bf16 %v536_v8, %v528_v7 }
 0x1a7   : > { %707 = vmatpush.bf16.msk.msra.mxu2 %vm1003_vm7, %v706_v9  ;;  %720 = vmatpush.bf16.msk.msra.mxu3 %vm1016_vm9, %v719_v10  ;;  %vm1253_vm7 = vcmp.lt.s32.totalorder %v924_v4, 15  ;;  %vm1254_vm9 = vcmp.lt.s32.totalorder %v924_v4, 1 }
 0x1a8   : > { %v504_v50 = vsel %vm1253_vm7, %v819_v21, %v818_v22  ;;  %vm1255_vm5 = vmmov %vm1253_vm7 }
 0x1a9   : > { %v822_v23 = vpop.permute.xlu1 %821  ;;  %v503_v32 = vsel %vm1255_vm5, %v818_v22, %v819_v21  ;;  %vm1256_vm6 = vmmov %vm1254_vm9 }
 0x1aa   : > { %v824_v13 = vunpack.i.h.bf16 %v822_v23  ;;  %v823_v29 = vunpack.i.l.bf16 %v822_v23 }
 0x1ab   : > { %710 = vmatpush.bf16.msk.msra.mxu2 %vm1026_vm12, %v709_v25  ;;  %723 = vmatpush.bf16.msk.msra.mxu3 %vm1033_vm13, %v722_v26  ;;  %vm1257_vm12 = vcmp.lt.s32.totalorder %v924_v4, 17 }
 0x1ac   : > { %v512_v54 = vsel %vm1254_vm9, %v824_v13, %v823_v29  ;;  %v511_v33 = vsel %vm1256_vm6, %v823_v29, %v824_v13  ;;  %v488_v36 = vsel %vm1257_vm12, %v829_v30, %v828_v31  ;;  %vm1258_vm13 = vmmov %vm1257_vm12 }
 0x1ad   : > { %v712_v34 = vpack.c.bf16 %v512_v54, %v504_v50  ;;  %v725_v35 = vpack.c.bf16 %v511_v33, %v503_v32  ;;  %v487_v37 = vsel %vm1258_vm13, %v828_v31, %v829_v30  ;;  %v715_v38 = vpack.c.bf16 %v496_v60, %v488_v36 }
 0x1ae   : > { %v728_v39 = vpack.c.bf16 %v495_v61, %v487_v37 }
 0x1af   : > { %713 = vmatpush.bf16.msk.msra.mxu2 %vm1064_vm15, %v712_v34  ;;  %726 = vmatpush.bf16.msk.msra.mxu3 %vm1074_vm14, %v725_v35 }
 0x1b1   : > { %v597_v18 = vpop.permute.xlu1 %596 }
 0x1b3   : > { %716 = vmatpush.bf16.msk.msra.mxu2 %vm1100_vm8, %v715_v38  ;;  %729 = vmatpush.bf16.msk.msra.mxu3 %vm1106_vm1, %v728_v39 }
 0x1b6   : > { %717 = vmatmul.msk.bf16.vlgmr.msra.gmra.mxu2 %vm428_vm4, %v557_v15  ;;  %730 = vmatmul.msk.bf16.vlgmr.msra.gmra.mxu3 %vm428_vm4, %v557_v15 }
 0x239   : > { %v576_v4 = vpop.f32.mrf.mxu2  ;;  %v589_v40 = vpop.f32.mrf.mxu3 }
 0x23a   : > { %v599_v41 = vmul.f32 %v597_v18, %v576_v4  ;;  %v600_v42 = vmul.f32 %v597_v18, %v589_v40 }
 0x23c   : > { %v607_v16 = vadd.f32 %v605_v43, %v599_v41  ;;  %v608_v44 = vadd.f32 %v605_v43, %v600_v42 }
 0x23e   : > { %v609_v45 = vadd.f32 %v607_v16, %v910_v0  ;;  %v610_v17 = vadd.f32 %v608_v44, %v912_v1 }
 0x240   : > { %v611_v46 = vmax.f32 %v609_v45, 0.0  ;;  %v612_v47 = vmax.f32 %v610_v17, 0.0 }
 0x241   : > { %v578_v48 = vpop.f32.mrf.mxu2  ;;  %v591_v49 = vpop.f32.mrf.mxu3 }
 0x242   : > { %613 = vst [vmem:[%s278_s9] sm:$0xff] %v611_v46 }
 0x243   : > { %614 = vst [vmem:[%s278_s9 + $0x8] sm:$0xff] %v612_v47 }
 0x244 PF: > { %s17_s24 = sadd.s32 1, %s842_s24  }
 0x245   : > { %p14_p4 = scmp.ge.s32.totalorder %s17_s24, 4  }
 0x247   :  { %16 = sbr.rel (!%p14_p4) target bundleno = 1 (0x1), region = 78 }

</bundles_post_ra>
